<compile_context>
chip_gen: v7x
topology: tpu7x:2x2x1
jax: 0.10.0
libtpu: 0.0.40
codegen_flags: <defaults>
</compile_context>

<pallas_src>
import functools

import jax
import jax.numpy as jnp
from jax.experimental import pallas as pl
from jax.experimental.pallas import tpu as pltpu

HIDDEN = 128


def _round_up(n, m):
    return ((n + m - 1) // m) * m


def ptm_head_kernel(x_ref, w1_ref, b1_ref, w2_ref, b2_ref, o_ref, *, compute_dtype):
    # x_ref:(TB,E) native dtype  w1_ref:(E,128) bf16  b1_ref:(1,128) f32
    # w2_ref:(128,1) f32         b2_ref:(1,1) f32 (SMEM)  o_ref:(TB,1) f32
    x_t = x_ref[...].astype(compute_dtype)                     # in-kernel cast (VPU)
    h = jnp.dot(x_t, w1_ref[...],
                preferred_element_type=jnp.float32)            # (TB,128) MXU, f32 acc
    h = jnp.maximum(h + b1_ref[...], 0.0)                      # bias + ReLU (f32 VPU)
    # Layer 2: (TB,128) @ (128,1) with w2 as the stationary weight — no per-tile
    # activation->MXU-weight reload and no XLU transpose (old einsum formulation).
    y = jnp.dot(h, w2_ref[...], preferred_element_type=jnp.float32)   # (TB,1)
    o_ref[...] = (y + b2_ref[0, 0]).astype(o_ref.dtype)


@functools.partial(jax.jit, static_argnames=("compute_dtype", "target_tile_bytes"))
def ptm_head_forward(x, w1, b1, w2, b2, *, compute_dtype=jnp.bfloat16,
                     target_tile_bytes=4 * 2**20):
    """x:(B,E); w1:(E,128); b1:(1,128); w2:(128,1); b2:(1,1). Returns (B,1) f32."""
    B, E = x.shape
    H = w1.shape[1]
    assert w1.shape == (E, H) and b1.shape == (1, H)
    assert w2.shape == (H, 1) and b2.shape == (1, 1)

    x_bpe = x.dtype.itemsize
    w_bpe = jnp.dtype(compute_dtype).itemsize

    # ---- VMEM ceiling for this generation (v5e/v6e: 128 MiB, v7x: 64 MiB). ----
    try:
        vmem_cap = int(pltpu.get_tpu_info().vmem_capacity_bytes)
    except Exception:
        vmem_cap = 64 * 2**20                        # conservative (v7x) fallback
    vmem_ceiling = vmem_cap - 8 * 2**20              # headroom for Mosaic internals

    # ---- Batch tile: pick TB from a byte target, not a fixed row count. ----
    row_bytes = E * x_bpe
    n_buf = 3                                        # x-stream buffers (Buffered(3))
    fixed_bytes = E * H * w_bpe + 2 * H * 4 + (2 << 20)       # w1, b1, w2 + slack

    def _tile_bytes(tb):
        # n_buf x buffers + f32 h (with a same-size allowance) + double-buffered out.
        return n_buf * tb * row_bytes + 2 * tb * H * 4 + 2 * tb * 4

    TB = _round_up(max(target_tile_bytes // max(row_bytes, 1), 256), 256)
    if B >= 512:
        # Keep >= 2 tiles so dimension_semantics=("parallel",) feeds both v7x TCs.
        TB = min(TB, _round_up(pl.cdiv(B, 2), 256))
    TB = min(TB, _round_up(B, 256))
    while TB > 256 and fixed_bytes + _tile_bytes(TB) > vmem_ceiling:
        TB -= 256
    num_tiles = pl.cdiv(B, TB)
    # TODO(synk): for emb_dim so large that even TB=256 misses the VMEM budget, add a
    # K grid axis over E with an f32 accumulator instead of growing the limit.

    vmem_limit = int(min(vmem_ceiling,
                         max(32 * 2**20, fixed_bytes + _tile_bytes(TB))))

    # Weights: bf16 w1 feeds the MXU at native rate; biases / w2 stay f32 (tiny).
    w1_c = w1.astype(compute_dtype)
    b1_f = b1.astype(jnp.float32)
    w2_f = w2.astype(jnp.float32)
    b2_f = b2.astype(jnp.float32)

    cost = pl.CostEstimate(
        flops=2 * B * H * (E + 1),
        transcendentals=0,
        bytes_accessed=int(x.size * x_bpe + w1_c.size * w_bpe
                           + (b1_f.size + w2_f.size + b2_f.size + B) * 4),
    )

    # x stream: triple-buffer when there is more than one tile (guarded so the spec
    # still constructs on jax versions without pipeline_mode).
    x_index = lambda i: (i, 0)
    x_spec = pl.BlockSpec((TB, E), x_index)
    if num_tiles > 1 and hasattr(pl, "Buffered"):
        try:
            x_spec = pl.BlockSpec((TB, E), x_index, pipeline_mode=pl.Buffered(3))
        except TypeError:
            pass

    out = pl.pallas_call(
        functools.partial(ptm_head_kernel, compute_dtype=compute_dtype),
        out_shape=jax.ShapeDtypeStruct((B, 1), jnp.float32),
        grid=(num_tiles,),
        in_specs=[
            x_spec,                                               # x: streamed per tile
            pl.BlockSpec((E, H), lambda i: (0, 0)),               # w1: VMEM-resident
            pl.BlockSpec((1, H), lambda i: (0, 0)),               # b1: VMEM-resident
            pl.BlockSpec((H, 1), lambda i: (0, 0)),               # w2: VMEM-resident
            pl.BlockSpec(memory_space=pltpu.MemorySpace.SMEM),    # b2: SMEM scalar
        ],
        out_specs=pl.BlockSpec((TB, 1), lambda i: (i, 0)),
        compiler_params=pltpu.CompilerParams(
            dimension_semantics=("parallel",),
            vmem_limit_bytes=vmem_limit,
        ),
        cost_estimate=cost,
    )(x, w1_c, b1_f, w2_f, b2_f)

    return out


def init_params(key, emb_dim, hidden=HIDDEN):
    """Deterministic init mimicking nn.Linear defaults (uniform +/- 1/sqrt(fan_in))."""
    k1, k2, k3, k4 = jax.random.split(key, 4)
    bound1 = 1.0 / jnp.sqrt(emb_dim)
    bound2 = 1.0 / jnp.sqrt(hidden)
    w1 = jax.random.uniform(k1, (emb_dim, hidden), jnp.float32, -bound1, bound1)
    b1 = jax.random.uniform(k2, (1, hidden), jnp.float32, -bound1, bound1)
    w2 = jax.random.uniform(k3, (hidden, 1), jnp.float32, -bound2, bound2)
    b2 = jax.random.uniform(k4, (1, 1), jnp.float32, -bound2, bound2)
    return w1, b1, w2, b2


if __name__ == "__main__":
    key = jax.random.PRNGKey(0)
    kx, kp = jax.random.split(key)

    batch, emb_dim = 4, 32
    x = jax.random.normal(kx, (batch, emb_dim), jnp.float32)
    w1, b1, w2, b2 = init_params(kp, emb_dim)

    out = ptm_head_forward(x, w1, b1, w2, b2)
    out = jax.block_until_ready(out)
    assert out.shape == (batch, 1)

    # Reference with matched precision (bf16 layer-1 inputs, f32 accumulation).
    h_ref = jnp.dot(x.astype(jnp.bfloat16), w1.astype(jnp.bfloat16),
                    preferred_element_type=jnp.float32) + b1
    ref = jnp.maximum(h_ref, 0.0) @ w2 + b2
    assert jnp.allclose(out, ref, atol=1e-4, rtol=1e-4), (out, ref)

    # Sanity check vs. pure-f32 reference (bf16 streaming, f32 accumulate).
    ref_f32 = jnp.maximum(x @ w1 + b1, 0.0) @ w2 + b2
    assert jnp.allclose(out, ref_f32, atol=5e-2, rtol=5e-2)

    # TODO(synk): PTMHead.predict (embed_sequence + expm1 post-processing) is a
    # host-side utility outside the module's forward pass; not implemented here.
    print("KERNEL_OK")
</pallas_src>

<mosaic_0001>
module attributes {stable_mosaic.version = 11 : i64} {
  func.func @ptm_head_kernel(%arg0: i32, %arg1: memref<256x32xf32, #tpu.memory_space<vmem>>, %arg2: memref<32x128xbf16, #tpu.memory_space<vmem>>, %arg3: memref<1x128xf32, #tpu.memory_space<vmem>>, %arg4: memref<128x1xf32, #tpu.memory_space<vmem>>, %arg5: memref<1x1xf32, #tpu.memory_space<smem>>, %arg6: memref<256x1xf32, #tpu.memory_space<vmem>>) attributes {dimension_semantics = [#tpu.dimension_semantics<parallel>], iteration_bounds = array<i64: 1>, scalar_prefetch = 0 : i64, scratch_operands = 0 : i64, tpu.core_type = #tpu.core_type<tc>, window_params = [{transform_indices = @transform_0, window_bounds = array<i64: 256, 32>}, {pipeline_mode = #tpu.pipeline_mode<synchronous>, transform_indices = @transform_1, window_bounds = array<i64: 32, 128>}, {pipeline_mode = #tpu.pipeline_mode<synchronous>, transform_indices = @transform_2, window_bounds = array<i64: 1, 128>}, {pipeline_mode = #tpu.pipeline_mode<synchronous>, transform_indices = @transform_3, window_bounds = array<i64: 128, 1>}, {transform_indices = @transform_4, window_bounds = array<i64: 1, 1>}, {transform_indices = @transform_5, window_bounds = array<i64: 256, 1>}]} {
    %c0 = arith.constant 0 : index
    %c0_0 = arith.constant 0 : index
    %0 = vector.load %arg1[%c0, %c0_0] : memref<256x32xf32, #tpu.memory_space<vmem>>, vector<256x32xf32>
    %1 = arith.truncf %0 : vector<256x32xf32> to vector<256x32xbf16>
    %c0_1 = arith.constant 0 : index
    %c0_2 = arith.constant 0 : index
    %2 = vector.load %arg2[%c0_1, %c0_2] : memref<32x128xbf16, #tpu.memory_space<vmem>>, vector<32x128xbf16>
    %cst = arith.constant dense<0.000000e+00> : vector<256x128xf32>
    %3 = tpu.matmul %1, %2, %cst {dimension_numbers = #tpu.dot_dimension_numbers<[1], [0], [0], [1], [0, 0, 1, 1], [], []>} : vector<256x32xbf16>, vector<32x128xbf16>, vector<256x128xf32> -> vector<256x128xf32>
    %c0_3 = arith.constant 0 : index
    %c0_4 = arith.constant 0 : index
    %4 = vector.load %arg3[%c0_3, %c0_4] : memref<1x128xf32, #tpu.memory_space<vmem>>, vector<1x128xf32>
    %5 = vector.broadcast %4 : vector<1x128xf32> to vector<256x128xf32>
    %6 = arith.addf %3, %5 : vector<256x128xf32>
    %cst_5 = arith.constant 0.000000e+00 : f32
    %7 = vector.broadcast %cst_5 : f32 to vector<256x128xf32>
    %8 = arith.maximumf %6, %7 : vector<256x128xf32>
    %c0_6 = arith.constant 0 : index
    %c0_7 = arith.constant 0 : index
    %9 = vector.load %arg4[%c0_6, %c0_7] : memref<128x1xf32, #tpu.memory_space<vmem>>, vector<128x1xf32>
    %cst_8 = arith.constant dense<0.000000e+00> : vector<256x1xf32>
    %10 = tpu.matmul %8, %9, %cst_8 {dimension_numbers = #tpu.dot_dimension_numbers<[1], [0], [0], [1], [0, 0, 1, 1], [], []>} : vector<256x128xf32>, vector<128x1xf32>, vector<256x1xf32> -> vector<256x1xf32>
    %c0_9 = arith.constant 0 : index
    %c0_10 = arith.constant 0 : index
    %11 = memref.load %arg5[%c0_9, %c0_10] : memref<1x1xf32, #tpu.memory_space<smem>>
    %12 = vector.broadcast %11 : f32 to vector<256x1xf32>
    %13 = arith.addf %10, %12 : vector<256x1xf32>
    %c0_11 = arith.constant 0 : index
    %c0_12 = arith.constant 0 : index
    %14 = vector.load %arg6[%c0_11, %c0_12] : memref<256x1xf32, #tpu.memory_space<vmem>>, vector<256x1xf32>
    tpu.vector_store %arg6[%c0_11, %c0_12], %13 {strides = array<i32>} : memref<256x1xf32, #tpu.memory_space<vmem>>, vector<256x1xf32>,
    return
  }
  func.func @transform_0(%arg0: i32) -> (i32, i32) {
    %c0_i32 = arith.constant 0 : i32
    %c0_i32_0 = arith.constant 0 : i32
    return %arg0, %c0_i32 : i32, i32
  }
  func.func @transform_1(%arg0: i32) -> (i32, i32) {
    %c0_i32 = arith.constant 0 : i32
    %c0_i32_0 = arith.constant 0 : i32
    %c0_i32_1 = arith.constant 0 : i32
    return %c0_i32, %c0_i32_0 : i32, i32
  }
  func.func @transform_2(%arg0: i32) -> (i32, i32) {
    %c0_i32 = arith.constant 0 : i32
    %c0_i32_0 = arith.constant 0 : i32
    %c0_i32_1 = arith.constant 0 : i32
    return %c0_i32, %c0_i32_0 : i32, i32
  }
  func.func @transform_3(%arg0: i32) -> (i32, i32) {
    %c0_i32 = arith.constant 0 : i32
    %c0_i32_0 = arith.constant 0 : i32
    %c0_i32_1 = arith.constant 0 : i32
    return %c0_i32, %c0_i32_0 : i32, i32
  }
  func.func @transform_4(%arg0: i32) -> (i32, i32) {
    %c0_i32 = arith.constant 0 : i32
    %c0_i32_0 = arith.constant 0 : i32
    %c0_i32_1 = arith.constant 0 : i32
    return %c0_i32, %c0_i32_0 : i32, i32
  }
  func.func @transform_5(%arg0: i32) -> (i32, i32) {
    %c0_i32 = arith.constant 0 : i32
    %c0_i32_0 = arith.constant 0 : i32
    return %arg0, %c0_i32 : i32, i32
  }
}

</mosaic_0001>

<bundles_post_ra>
// kernel: ptm_head_forward.1
= control target key start
LH: loop header
LB: loop body
LE: loop exit
PB: predicated region body
PF: predicated region fallthrough
CT: control target
= control target key end

     0   :  { %vm93_vm0 = vcmask 261120   ;;  %vm578_vm1 = vcmask 7168   ;;  %s1140_s0 = inlined_call_operand.vmem [shape: f32[4,32], index: 0, kind: input, shape index: {}]   ;;  %s1141_s1 = inlined_call_operand.vmem [shape: bf16[32,128], index: 1, kind: input, shape index: {}]   ;;  %s1142_s2 = inlined_call_operand.vmem [shape: f32[1,128], index: 2, kind: input, shape index: {}]   ;;  %s1143_s3 = inlined_call_operand.vmem [shape: f32[128,1], index: 3, kind: input, shape index: {}]   ;;  %s1144_s4 = inlined_call_operand.<no memory space> [shape: f32[1,1], index: 4, kind: input, shape index: {}]   ;;  %s1145_s5 = inlined_call_operand.vmem [shape: f32[4,1], index: 5, kind: output, shape index: {}]  }
   0x1   :  { %v899_v0 = vld [vmem:[%s1141_s1] sm:$0xff]   ;;  %v900_v1 = vld [vmem:[%s1141_s1 + $0x8] sm:$0xff]   ;;  %v24_v5 = vld [vmem:[%s1140_s0 + $0x10] sm:$0xff] }
   0x2   :  { %735 = vmatprep.subr.bf16.mxu0 %v899_v0  ;;  %v22_v2 = vld [vmem:[%s1140_s0] sm:$0xff]  ;;  %v23_v3 = vld [vmem:[%s1140_s0 + $0x8] sm:$0xff]  ;;  %v25_v6 = vld [vmem:[%s1140_s0 + $0x18] sm:$0xff] }
   0x3   :  { %736 = vmatpush3.bf16.msra.mxu0 %v899_v0  ;;  %v54_v4 = vpack.c.bf16 %v23_v3, %v22_v2  ;;  %v26_v7 = vld [vmem:[%s1140_s0 + $0x20] sm:$0xff]  ;;  %v27_v8 = vld [vmem:[%s1140_s0 + $0x28] sm:$0xff]  ;;  %v55_v9 = vpack.c.bf16 %v25_v6, %v24_v5  ;;  %v28_v11 = vld [vmem:[%s1140_s0 + $0x30] sm:$0xff] }
   0x4   :  { %737 = vmatprep.subr.bf16.mxu0 %v900_v1  ;;  %v56_v10 = vpack.c.bf16 %v27_v8, %v26_v7  ;;  %v29_v12 = vld [vmem:[%s1140_s0 + $0x38] sm:$0xff]  ;;  %v30_v13 = vld [vmem:[%s1140_s0 + $0x40] sm:$0xff]  ;;  %v31_v14 = vld [vmem:[%s1140_s0 + $0x48] sm:$0xff] }
   0x5   :  { %739 = vmatprep.mubr.msk.bf16.mxu0 %vm93_vm0, %v54_v4  ;;  %v335_v15 = vld [vmem:[%s1143_s3] sm:$0xff]  ;;  %v336_v16 = vld [vmem:[%s1143_s3 + $0x8] sm:$0xff]  ;;  %v337_v17 = vld [vmem:[%s1143_s3 + $0x10] sm:$0xff]  ;;  %v57_v19 = vpack.c.bf16 %v29_v12, %v28_v11  ;;  %v58_v22 = vpack.c.bf16 %v31_v14, %v30_v13 }
   0x6   :  { %v338_v18 = vld [vmem:[%s1143_s3 + $0x18] sm:$0xff]  ;;  %v851_v20 = vpack.c.bf16 %v336_v16, %v335_v15  ;;  %v339_v23 = vld [vmem:[%s1143_s3 + $0x20] sm:$0xff]  ;;  %v340_v24 = vld [vmem:[%s1143_s3 + $0x28] sm:$0xff] }
   0x7   :  { %738 = vmatpush3.bf16.msra.mxu0 %v900_v1  ;;  %v855_v21 = vpack.c.bf16 %v338_v18, %v337_v17  ;;  %v32_v25 = vld [vmem:[%s1140_s0 + $0x50] sm:$0xff]  ;;  %v859_v26 = vpack.c.bf16 %v340_v24, %v339_v23  ;;  %v33_v27 = vld [vmem:[%s1140_s0 + $0x58] sm:$0xff]  ;;  %v34_v30 = vld [vmem:[%s1140_s0 + $0x60] sm:$0xff] }
   0x8   :  { %852 = vmatprep.subr.bf16.mxu0 %v851_v20  ;;  %883 = vmatprep.subr.bf16.mxu1 %v851_v20  ;;  %v341_v28 = vld [vmem:[%s1143_s3 + $0x30] sm:$0xff]  ;;  %v342_v29 = vld [vmem:[%s1143_s3 + $0x38] sm:$0xff]  ;;  %v35_v31 = vld [vmem:[%s1140_s0 + $0x68] sm:$0xff]  ;;  %v59_v32 = vpack.c.bf16 %v33_v27, %v32_v25 }
   0x9   :  { %891 = vmatpush3.bf16.msra.mxu1 %v851_v20  ;;  %v863_v33 = vpack.c.bf16 %v342_v29, %v341_v28  ;;  %v60_v34 = vpack.c.bf16 %v35_v31, %v34_v30  ;;  %v343_v35 = vld [vmem:[%s1143_s3 + $0x40] sm:$0xff]  ;;  %v344_v36 = vld [vmem:[%s1143_s3 + $0x48] sm:$0xff]  ;;  %v36_v37 = vld [vmem:[%s1140_s0 + $0x70] sm:$0xff] }
   0xa   :  { %740 = vmatmul.mubr.msk.bf16.vlgmr.msra.gmra.mrb[0].mxu0 %vm93_vm0, %v55_v9  ;;  %884 = vmatprep.subr.bf16.mxu1 %v855_v21  ;;  %v867_v38 = vpack.c.bf16 %v344_v36, %v343_v35  ;;  %v37_v39 = vld [vmem:[%s1140_s0 + $0x78] sm:$0xff]  ;;  %v345_v40 = vld [vmem:[%s1143_s3 + $0x50] sm:$0xff]  ;;  %v38_v42 = vld [vmem:[%s1140_s0 + $0x80] sm:$0xff] }
   0xb   :  { %743 = vmatprep.mubr.msk.bf16.mxu0 %vm93_vm0, %v56_v10  ;;  %854 = vmatpush3.bf16.msra.mxu0 %v851_v20  ;;  %v346_v41 = vld [vmem:[%s1143_s3 + $0x58] sm:$0xff]  ;;  %v39_v43 = vld [vmem:[%s1140_s0 + $0x88] sm:$0xff]  ;;  %v61_v44 = vpack.c.bf16 %v37_v39, %v36_v37  ;;  %v40_v47 = vld [vmem:[%s1140_s0 + $0x90] sm:$0xff] }
   0xc   :  { %856 = vmatprep.subr.bf16.mxu0 %v855_v21  ;;  %v871_v45 = vpack.c.bf16 %v346_v41, %v345_v40  ;;  %v62_v46 = vpack.c.bf16 %v39_v43, %v38_v42  ;;  %v41_v48 = vld [vmem:[%s1140_s0 + $0x98] sm:$0xff]  ;;  %v42_v49 = vld [vmem:[%s1140_s0 + $0xa0] sm:$0xff]  ;;  %v43_v50 = vld [vmem:[%s1140_s0 + $0xa8] sm:$0xff] }
   0xd   :  { %892 = vmatpush3.bf16.msra.mxu1 %v855_v21  ;;  %v63_v51 = vpack.c.bf16 %v41_v48, %v40_v47  ;;  %v64_v52 = vpack.c.bf16 %v43_v50, %v42_v49  ;;  %v44_v53 = vld [vmem:[%s1140_s0 + $0xb0] sm:$0xff]  ;;  %v45_v54 = vld [vmem:[%s1140_s0 + $0xb8] sm:$0xff]  ;;  %v46_v55 = vld [vmem:[%s1140_s0 + $0xc0] sm:$0xff] }
   0xe   :  { %885 = vmatprep.subr.bf16.mxu1 %v859_v26  ;;  %v47_v56 = vld [vmem:[%s1140_s0 + $0xc8] sm:$0xff]  ;;  %v65_v57 = vpack.c.bf16 %v45_v54, %v44_v53  ;;  %v48_v59 = vld [vmem:[%s1140_s0 + $0xd0] sm:$0xff]  ;;  %v49_v60 = vld [vmem:[%s1140_s0 + $0xd8] sm:$0xff] }
   0xf   :  { %858 = vmatpush3.bf16.msra.mxu0 %v855_v21  ;;  %v66_v58 = vpack.c.bf16 %v47_v56, %v46_v55  ;;  %v50_v61 = vld [vmem:[%s1140_s0 + $0xe0] sm:$0xff]  ;;  %v51_v62 = vld [vmem:[%s1140_s0 + $0xe8] sm:$0xff]  ;;  %v67_v63 = vpack.c.bf16 %v49_v60, %v48_v59  ;;  %v52_v1 = vld [vmem:[%s1140_s0 + $0xf0] sm:$0xff] }
  0x10   :  { %860 = vmatprep.subr.bf16.mxu0 %v859_v26  ;;  %v68_v0 = vpack.c.bf16 %v51_v62, %v50_v61  ;;  %v53_v2 = vld [vmem:[%s1140_s0 + $0xf8] sm:$0xff]  ;;  %v347_v4 = vld [vmem:[%s1143_s3 + $0x60] sm:$0xff]  ;;  %v348_v5 = vld [vmem:[%s1143_s3 + $0x68] sm:$0xff] }
  0x11   :  { %893 = vmatpush3.bf16.msra.mxu1 %v859_v26  ;;  %v69_v3 = vpack.c.bf16 %v53_v2, %v52_v1  ;;  %v875_v6 = vpack.c.bf16 %v348_v5, %v347_v4  ;;  %v349_v7 = vld [vmem:[%s1143_s3 + $0x70] sm:$0xff]  ;;  %v350_v8 = vld [vmem:[%s1143_s3 + $0x78] sm:$0xff]  ;;  %v1100_v10 = vld [vmem:[%s1142_s2] ss:$0 sm:$0xff] }
  0x12   :  { %744 = vmatmul.mubr.msk.bf16.gmra.mrb[4].mxu0 %vm93_vm0, %v57_v19  ;;  %886 = vmatprep.subr.bf16.mxu1 %v863_v33  ;;  %v879_v9 = vpack.c.bf16 %v350_v8, %v349_v7 }
  0x13   :  { %747 = vmatprep.mubr.msk.bf16.mxu0 %vm93_vm0, %v58_v22  ;;  %862 = vmatpush3.bf16.msra.mxu0 %v859_v26 }
  0x14   :  { %864 = vmatprep.subr.bf16.mxu0 %v863_v33 }
  0x15   :  { %894 = vmatpush3.bf16.msra.mxu1 %v863_v33 }
  0x16   :  { %887 = vmatprep.subr.bf16.mxu1 %v867_v38 }
  0x17   :  { %866 = vmatpush3.bf16.msra.mxu0 %v863_v33 }
  0x18   :  { %868 = vmatprep.subr.bf16.mxu0 %v867_v38 }
  0x19   :  { %895 = vmatpush3.bf16.msra.mxu1 %v867_v38 }
  0x1a   :  { %748 = vmatmul.mubr.msk.bf16.gmra.mrb[8].mxu0 %vm93_vm0, %v59_v32  ;;  %888 = vmatprep.subr.bf16.mxu1 %v871_v45 }
  0x1b   :  { %751 = vmatprep.mubr.msk.bf16.mxu0 %vm93_vm0, %v60_v34  ;;  %870 = vmatpush3.bf16.msra.mxu0 %v867_v38 }
  0x1c   :  { %872 = vmatprep.subr.bf16.mxu0 %v871_v45 }
  0x1d   :  { %896 = vmatpush3.bf16.msra.mxu1 %v871_v45 }
  0x1e   :  { %889 = vmatprep.subr.bf16.mxu1 %v875_v6 }
  0x1f   :  { %874 = vmatpush3.bf16.msra.mxu0 %v871_v45 }
  0x20   :  { %876 = vmatprep.subr.bf16.mxu0 %v875_v6 }
  0x21   :  { %897 = vmatpush3.bf16.msra.mxu1 %v875_v6 }
  0x22   :  { %752 = vmatmul.mubr.msk.bf16.gmra.mrb[12].mxu0 %vm93_vm0, %v61_v44  ;;  %890 = vmatprep.subr.bf16.mxu1 %v879_v9 }
  0x23   :  { %755 = vmatprep.mubr.msk.bf16.mxu0 %vm93_vm0, %v62_v46  ;;  %878 = vmatpush3.bf16.msra.mxu0 %v875_v6 }
  0x24   :  { %880 = vmatprep.subr.bf16.mxu0 %v879_v9 }
  0x25   :  { %898 = vmatpush3.bf16.msra.mxu1 %v879_v9 }
  0x27   :  { %882 = vmatpush3.bf16.msra.mxu0 %v879_v9 }
  0x2a   :  { %756 = vmatmul.mubr.msk.bf16.gmra.mrb[16].mxu0 %vm93_vm0, %v63_v51 }
  0x2b   :  { %759 = vmatprep.mubr.msk.bf16.mxu0 %vm93_vm0, %v64_v52 }
  0x32   :  { %760 = vmatmul.mubr.msk.bf16.gmra.mrb[20].mxu0 %vm93_vm0, %v65_v57 }
  0x33   :  { %763 = vmatprep.mubr.msk.bf16.mxu0 %vm93_vm0, %v66_v58 }
  0x3a   :  { %764 = vmatmul.mubr.msk.bf16.gmra.mrb[24].mxu0 %vm93_vm0, %v67_v63 }
  0x3b   :  { %767 = vmatprep.mubr.msk.bf16.mxu0 %vm93_vm0, %v68_v0 }
  0x42   :  { %768 = vmatmul.mubr.msk.bf16.gmra.mrb[28].mxu0 %vm93_vm0, %v69_v3 }
  0xdd   :  { %v741_v11 = vpop.f32.mrb[0].mxu0 }
  0xde   :  { %v176_v12 = vpop.f32.mrb[1].mxu0  ;;  %v185_v15 = vadd.f32 %v741_v11, %v1100_v10 }
  0xdf   :  { %v177_v13 = vadd.f32 %v1100_v10, %v176_v12  ;;  %v742_v14 = vpop.f32.mrb[2].mxu0 }
  0xe0   :  { %v179_v16 = vpop.f32.mrb[3].mxu0  ;;  %v188_v19 = vadd.f32 %v742_v14, %v1100_v10  ;;  %v305_v21 = vmax.f32 %v185_v15, 0.0 }
  0xe1   :  { %v303_v17 = vmax.f32 %v177_v13, 0.0  ;;  %v180_v18 = vadd.f32 %v1100_v10, %v179_v16 }
  0xe2   :  { %v306_v25 = vmax.f32 %v188_v19, 0.0 }
  0xe3   :  { %v304_v20 = vmax.f32 %v180_v18, 0.0  ;;  %803 = vmatprep.mubr.f32.mxu0 %v303_v17 }
  0xe5   :  { %v745_v22 = vpop.f32.mrb[4].mxu0  ;;  %804 = vmatmul.mubr.f32.vlgmr.msra.gmra.mrb[32].mxu0 %v304_v20 }
  0xe6   :  { %v192_v23 = vpop.f32.mrb[5].mxu0  ;;  %806 = vmatprep.mubr.f32.mxu0 %v305_v21  ;;  %v201_v24 = vadd.f32 %v745_v22, %v1100_v10 }
  0xe7   :  { %v193_v26 = vadd.f32 %v1100_v10, %v192_v23  ;;  %v746_v27 = vpop.f32.mrb[6].mxu0 }
  0xe8   :  { %v204_v28 = vadd.f32 %v746_v27, %v1100_v10  ;;  %v195_v29 = vpop.f32.mrb[7].mxu0  ;;  %v309_v30 = vmax.f32 %v201_v24, 0.0 }
  0xe9   :  { %v307_v31 = vmax.f32 %v193_v26, 0.0  ;;  %v196_v32 = vadd.f32 %v1100_v10, %v195_v29  ;;  %807 = vmatmul.mubr.f32.gmra.mrb[34].mxu0 %v306_v25 }
  0xea   :  { %v310_v33 = vmax.f32 %v204_v28, 0.0  ;;  %812 = vmatprep.mubr.f32.mxu1 %v309_v30 }
  0xeb   :  { %v308_v34 = vmax.f32 %v196_v32, 0.0  ;;  %809 = vmatprep.mubr.f32.mxu0 %v307_v31 }
  0xec   :  { %813 = vmatmul.mubr.f32.vlgmr.msra.gmra.mrb[0].mxu1 %v310_v33 }
  0xed   :  { %v749_v35 = vpop.f32.mrb[8].mxu0  ;;  %810 = vmatmul.mubr.f32.gmra.mrb[36].mxu0 %v308_v34 }
  0xee   :  { %v208_v36 = vpop.f32.mrb[9].mxu0  ;;  %v217_v39 = vadd.f32 %v749_v35, %v1100_v10 }
  0xef   :  { %v209_v37 = vadd.f32 %v1100_v10, %v208_v36  ;;  %v750_v38 = vpop.f32.mrb[10].mxu0 }
  0xf0   :  { %v211_v40 = vpop.f32.mrb[11].mxu0  ;;  %v220_v43 = vadd.f32 %v750_v38, %v1100_v10  ;;  %v313_v45 = vmax.f32 %v217_v39, 0.0 }
  0xf1   :  { %v311_v41 = vmax.f32 %v209_v37, 0.0  ;;  %v212_v42 = vadd.f32 %v1100_v10, %v211_v40 }
  0xf2   :  { %v314_v48 = vmax.f32 %v220_v43, 0.0 }
  0xf3   :  { %v312_v44 = vmax.f32 %v212_v42, 0.0  ;;  %815 = vmatprep.mubr.f32.mxu1 %v311_v41 }
  0xf5   :  { %v753_v46 = vpop.f32.mrb[12].mxu0  ;;  %816 = vmatmul.mubr.f32.gmra.mrb[2].mxu1 %v312_v44  ;;  %v352_v44 = vstv %s1144_s4 }
  0xf6   :  { %v224_v47 = vpop.f32.mrb[13].mxu0  ;;  %818 = vmatprep.mubr.f32.mxu1 %v313_v45  ;;  %v233_v51 = vadd.f32 %v753_v46, %v1100_v10 }
  0xf7   :  { %v225_v49 = vadd.f32 %v1100_v10, %v224_v47  ;;  %v754_v50 = vpop.f32.mrb[14].mxu0 }
  0xf8   :  { %v227_v52 = vpop.f32.mrb[15].mxu0  ;;  %v236_v55 = vadd.f32 %v754_v50, %v1100_v10  ;;  %v317_v57 = vmax.f32 %v233_v51, 0.0 }
  0xf9   :  { %v315_v53 = vmax.f32 %v225_v49, 0.0  ;;  %v228_v54 = vadd.f32 %v1100_v10, %v227_v52  ;;  %819 = vmatmul.mubr.f32.gmra.mrb[4].mxu1 %v314_v48 }
  0xfa   :  { %v318_v60 = vmax.f32 %v236_v55, 0.0 }
  0xfb   :  { %v316_v56 = vmax.f32 %v228_v54, 0.0  ;;  %821 = vmatprep.mubr.f32.mxu1 %v315_v53 }
  0xfd   :  { %v757_v58 = vpop.f32.mrb[16].mxu0  ;;  %822 = vmatmul.mubr.f32.gmra.mrb[6].mxu1 %v316_v56 }
  0xfe   :  { %v240_v59 = vpop.f32.mrb[17].mxu0  ;;  %824 = vmatprep.mubr.f32.mxu1 %v317_v57  ;;  %v249_v63 = vadd.f32 %v757_v58, %v1100_v10 }
  0xff   :  { %v241_v61 = vadd.f32 %v1100_v10, %v240_v59  ;;  %v758_v62 = vpop.f32.mrb[18].mxu0 }
 0x100   :  { %v243_v0 = vpop.f32.mrb[19].mxu0  ;;  %v252_v3 = vadd.f32 %v758_v62, %v1100_v10  ;;  %v321_v5 = vmax.f32 %v249_v63, 0.0 }
 0x101   :  { %v319_v1 = vmax.f32 %v241_v61, 0.0  ;;  %v244_v2 = vadd.f32 %v1100_v10, %v243_v0  ;;  %825 = vmatmul.mubr.f32.gmra.mrb[8].mxu1 %v318_v60 }
 0x102   :  { %v322_v8 = vmax.f32 %v252_v3, 0.0 }
 0x103   :  { %v320_v4 = vmax.f32 %v244_v2, 0.0  ;;  %827 = vmatprep.mubr.f32.mxu1 %v319_v1 }
 0x105   :  { %v761_v6 = vpop.f32.mrb[20].mxu0  ;;  %828 = vmatmul.mubr.f32.gmra.mrb[10].mxu1 %v320_v4 }
 0x106   :  { %v256_v7 = vpop.f32.mrb[21].mxu0  ;;  %830 = vmatprep.mubr.f32.mxu1 %v321_v5  ;;  %v265_v12 = vadd.f32 %v761_v6, %v1100_v10 }
 0x107   :  { %v257_v9 = vadd.f32 %v1100_v10, %v256_v7  ;;  %v762_v11 = vpop.f32.mrb[22].mxu0 }
 0x108   :  { %v259_v13 = vpop.f32.mrb[23].mxu0  ;;  %v268_v16 = vadd.f32 %v762_v11, %v1100_v10  ;;  %v325_v18 = vmax.f32 %v265_v12, 0.0 }
 0x109   :  { %v323_v14 = vmax.f32 %v257_v9, 0.0  ;;  %v260_v15 = vadd.f32 %v1100_v10, %v259_v13  ;;  %831 = vmatmul.mubr.f32.gmra.mrb[12].mxu1 %v322_v8 }
 0x10a   :  { %v326_v21 = vmax.f32 %v268_v16, 0.0 }
 0x10b   :  { %v324_v17 = vmax.f32 %v260_v15, 0.0  ;;  %833 = vmatprep.mubr.f32.mxu1 %v323_v14 }
 0x10d   :  { %v765_v19 = vpop.f32.mrb[24].mxu0  ;;  %834 = vmatmul.mubr.f32.gmra.mrb[14].mxu1 %v324_v17 }
 0x10e   :  { %v272_v20 = vpop.f32.mrb[25].mxu0  ;;  %836 = vmatprep.mubr.f32.mxu1 %v325_v18  ;;  %v281_v24 = vadd.f32 %v765_v19, %v1100_v10 }
 0x10f   :  { %v273_v22 = vadd.f32 %v1100_v10, %v272_v20  ;;  %v766_v23 = vpop.f32.mrb[26].mxu0 }
 0x110   :  { %v275_v25 = vpop.f32.mrb[27].mxu0  ;;  %v284_v28 = vadd.f32 %v766_v23, %v1100_v10  ;;  %v329_v30 = vmax.f32 %v281_v24, 0.0 }
 0x111   :  { %v327_v26 = vmax.f32 %v273_v22, 0.0  ;;  %v276_v27 = vadd.f32 %v1100_v10, %v275_v25  ;;  %837 = vmatmul.mubr.f32.gmra.mrb[16].mxu1 %v326_v21 }
 0x112   :  { %v330_v33 = vmax.f32 %v284_v28, 0.0 }
 0x113   :  { %v328_v29 = vmax.f32 %v276_v27, 0.0  ;;  %839 = vmatprep.mubr.f32.mxu1 %v327_v26 }
 0x115   :  { %v769_v31 = vpop.f32.mrb[28].mxu0  ;;  %840 = vmatmul.mubr.f32.gmra.mrb[18].mxu1 %v328_v29 }
 0x116   :  { %v288_v32 = vpop.f32.mrb[29].mxu0  ;;  %842 = vmatprep.mubr.f32.mxu1 %v329_v30  ;;  %v297_v36 = vadd.f32 %v769_v31, %v1100_v10 }
 0x117   :  { %v289_v34 = vadd.f32 %v1100_v10, %v288_v32  ;;  %v770_v35 = vpop.f32.mrb[30].mxu0 }
 0x118   :  { %v291_v37 = vpop.f32.mrb[31].mxu0  ;;  %v300_v40 = vadd.f32 %v770_v35, %v1100_v10  ;;  %v333_v42 = vmax.f32 %v297_v36, 0.0 }
 0x119   :  { %v331_v38 = vmax.f32 %v289_v34, 0.0  ;;  %v292_v39 = vadd.f32 %v1100_v10, %v291_v37  ;;  %843 = vmatmul.mubr.f32.gmra.mrb[20].mxu1 %v330_v33 }
 0x11a   :  { %v334_v43 = vmax.f32 %v300_v40, 0.0 }
 0x11b   :  { %v332_v41 = vmax.f32 %v292_v39, 0.0  ;;  %845 = vmatprep.mubr.f32.mxu1 %v331_v38 }
 0x11d   :  { %846 = vmatmul.mubr.f32.gmra.mrb[22].mxu1 %v332_v41 }
 0x11e   :  { %848 = vmatprep.mubr.f32.mxu1 %v333_v42 }
 0x121   :  { %849 = vmatmul.mubr.f32.gmra.mrb[24].mxu1 %v334_v43 }
 0x1b8   :  { %v805_v45 = vpop.f32.mrb[32].mxu0 }
 0x1b9   :  { %v419_v46 = vpop.f32.mrb[33].mxu0 }
 0x1ba   :  { %v420_v47 = vadd.f32 %v419_v46, %v352_v44 }
 0x1bc   :  { %579 = vst.msk [vmem:[#allocation3] sm:$0xff] %vm578_vm1, %v420_v47  ;;  %v808_v48 = vpop.f32.mrb[34].mxu0 }
 0x1bd   :  { %v429_v49 = vpop.f32.mrb[35].mxu0 }
 0x1bf   :  { %v814_v50 = vpop.f32.mrb[0].mxu1 }
 0x1c0   :  { %v811_v10 = vpop.f32.mrb[36].mxu0  ;;  %v449_v51 = vpop.f32.mrb[1].mxu1 }
 0x1c1   :  { %v439_v52 = vpop.f32.mrb[37].mxu0 }
 0x1c3   :  { %v628_v53 = vld [vmem:[#allocation3] sm:$0xf] }
 0x1c4   :  { %629 = vst [vmem:[%s1145_s5] sm:$0xf] %v628_v53 }
 0x1c8   :  { %v817_v54 = vpop.f32.mrb[2].mxu1 }
 0x1c9   :  { %v459_v55 = vpop.f32.mrb[3].mxu1 }
 0x1cc   :  { %v820_v56 = vpop.f32.mrb[4].mxu1 }
 0x1cd   :  { %v469_v57 = vpop.f32.mrb[5].mxu1 }
 0x1d0   :  { %v823_v58 = vpop.f32.mrb[6].mxu1 }
 0x1d1   :  { %v479_v59 = vpop.f32.mrb[7].mxu1 }
 0x1d4   :  { %v826_v60 = vpop.f32.mrb[8].mxu1 }
 0x1d5   :  { %v489_v61 = vpop.f32.mrb[9].mxu1 }
 0x1d8   :  { %v829_v62 = vpop.f32.mrb[10].mxu1 }
 0x1d9   :  { %v499_v63 = vpop.f32.mrb[11].mxu1 }
 0x1dc   :  { %v832_v0 = vpop.f32.mrb[12].mxu1 }
 0x1dd   :  { %v509_v1 = vpop.f32.mrb[13].mxu1 }
 0x1e0   :  { %v835_v2 = vpop.f32.mrb[14].mxu1 }
 0x1e1   :  { %v519_v3 = vpop.f32.mrb[15].mxu1 }
 0x1e4   :  { %v838_v4 = vpop.f32.mrb[16].mxu1 }
 0x1e5   :  { %v529_v5 = vpop.f32.mrb[17].mxu1 }
 0x1e8   :  { %v841_v6 = vpop.f32.mrb[18].mxu1 }
 0x1e9   :  { %v539_v7 = vpop.f32.mrb[19].mxu1 }
 0x1ec   :  { %v844_v8 = vpop.f32.mrb[20].mxu1 }
 0x1ed   :  { %v549_v9 = vpop.f32.mrb[21].mxu1 }
 0x1f0   :  { %v847_v11 = vpop.f32.mrb[22].mxu1 }
 0x1f1   :  { %v559_v12 = vpop.f32.mrb[23].mxu1 }
 0x1f4   :  { %v850_v13 = vpop.f32.mrb[24].mxu1 }
 0x1f5   :  { %v569_v14 = vpop.f32.mrb[25].mxu1 }

</bundles_post_ra>
